<compile_context>
chip_gen: v5e
topology: v5e:2x2
jax: 0.10.0
libtpu: 0.0.40
codegen_flags: <defaults>
</compile_context>

<pallas_src>
import functools

import jax
import jax.numpy as jnp
from jax.experimental import pallas as pl
from jax.experimental.pallas import tpu as pltpu


_LANE = 128
_DEFAULT_VMEM_BYTES = 64 * 1024 * 1024  # conservative fallback (v7x-sized)


def _round_up(a, m):
    return ((a + m - 1) // m) * m


def _sublane_pack(dtype):
    # Physical sublane packing: 32-bit -> 8 rows, 16-bit -> 16, 8-bit -> 32.
    return {4: 8, 2: 16, 1: 32}.get(jnp.dtype(dtype).itemsize, 8)


def _vmem_capacity_bytes():
    """Physical VMEM of the current generation (fallback: 64 MiB)."""
    try:
        info = pltpu.get_tpu_info()
        for attr in ("vmem_capacity_bytes", "vmem_size_bytes", "vmem_bytes"):
            cap = getattr(info, attr, None)
            if cap:
                return int(cap)
    except Exception:
        pass
    return _DEFAULT_VMEM_BYTES


def _bytes_per_lane(c, dtype):
    """Bytes of one 1-lane-wide (1, C, 1) column incl. sublane padding of C."""
    return _round_up(c, _sublane_pack(dtype)) * jnp.dtype(dtype).itemsize


def _choose_tile(hw, c, dtype, budget_bytes):
    """Largest multiple-of-128 lane tile whose (1, C, tile) block (with
    sublane-padded C) fits budget_bytes; clipped to the padded sample."""
    bpl = _bytes_per_lane(c, dtype)
    max_tile = max((budget_bytes // bpl) // _LANE, 1) * _LANE
    return min(max_tile, _round_up(hw, _LANE))


def _pass1_tile(hw_pad, t2, c, dtype, budget_bytes):
    """Largest multiple of t2 that divides hw_pad and fits pass-1's (2-buffer)
    budget, so both passes share the same padded extent."""
    bpl = _bytes_per_lane(c, dtype)
    n = hw_pad // t2
    best = 1
    for d in range(1, n + 1):
        if n % d == 0 and d * t2 * bpl <= budget_bytes:
            best = d
    return best * t2


# --------------------------------------------------------------------------
# Fused single-pass kernel: grid (N,), whole padded sample per block.
# Weights arrive transposed ((out, in) / column biases) so every intermediate
# keeps its natural layout (C on sublanes, 1 lane) — no in-kernel relayout.
# --------------------------------------------------------------------------
def _se_fused_kernel(x_ref, w1t_ref, b1t_ref, w2t_ref, b2t_ref, y_ref, *, inv_hw):
    x = x_ref[0]                                                     # (C, HWp)
    # Global average pool: f32 lane reduction -> (C, 1) column (natural layout).
    v = jnp.sum(x.astype(jnp.float32), axis=-1, keepdims=True) * inv_hw
    # Tiny SE MLP on column vectors (M/N=1 matmul; negligible next to the DMA).
    h = jnp.dot(w1t_ref[...], v, preferred_element_type=jnp.float32) + b1t_ref[...]
    h = jnp.maximum(h, 0.0)                                          # (hid, 1)
    z = jnp.dot(w2t_ref[...], h, preferred_element_type=jnp.float32) + b2t_ref[...]
    s = 1.0 / (1.0 + jnp.exp(-z))                                    # (C, 1) f32
    # Scale in x's dtype (keeps bf16 packed on v6e/v7x); broadcast along lanes.
    y_ref[0] = (x * s.astype(x.dtype)).astype(y_ref.dtype)


# --------------------------------------------------------------------------
# Two-pass fallback kernels (samples too large for VMEM).
# --------------------------------------------------------------------------
def _se_pool_kernel(x_ref, sum_ref):
    """Pass 1: accumulate spatial sums into a resident (1, C, 1) f32 block."""
    t = pl.program_id(1)

    @pl.when(t == 0)
    def _init():
        sum_ref[...] = jnp.zeros_like(sum_ref)

    # Mosaic lowers this reduce as VPU adds across lane-tiles plus a single
    # cross-lane step, and the keepdims result lands directly in the
    # accumulator's natural (C-on-sublane, 1-lane) layout.  An explicit
    # (C, t/128, 128) reshape-accumulate would force a relayout copy, so the
    # plain sum is kept.
    sum_ref[...] = sum_ref[...] + jnp.sum(
        x_ref[...].astype(jnp.float32), axis=-1, keepdims=True)


def _se_scale_kernel(x_ref, s_ref, y_ref):
    """Pass 2: y = x * score (score resident, already in x's dtype)."""
    y_ref[...] = (x_ref[...] * s_ref[...]).astype(y_ref.dtype)


# --------------------------------------------------------------------------
# Wrapper
# --------------------------------------------------------------------------
def se_block(x, w1, b1, w2, b2, *, force_two_pass=False):
    """SEBlock forward.

    x: (N, C, H, W); w1: (C, C//r); b1: (1, C//r); w2: (C//r, C); b2: (1, C).
    Weights are the transposed (in, out) form of torch.nn.Linear's (out, in).
    """
    N, C, H, W = x.shape
    hidden = w1.shape[1]
    hw = H * W
    itemsize = jnp.dtype(x.dtype).itemsize
    bpl = _bytes_per_lane(C, x.dtype)

    vmem_cap = _vmem_capacity_bytes()
    # ~48 MiB on 64 MiB parts (v7x), ~96 MiB on 128 MiB parts (v5e/v6e).
    vmem_limit = min(max((vmem_cap * 3) // 4, 32 * 1024 * 1024), 100 * 1024 * 1024)

    hw_pad128 = _round_up(hw, _LANE)
    slab_bytes = bpl * hw_pad128                 # one padded sample, x dtype
    slab_f32 = _round_up(C, 8) * hw_pad128 * 4   # in-kernel f32 reduce temp

    # Fused gate: 2x in + 2x out double buffers + f32 headroom must fit.
    fused_ok = (not force_two_pass) and (4 * slab_bytes + slab_f32 <= vmem_limit)

    x3 = x.reshape(N, C, hw)

    if fused_ok:
        # ---------------- fused single pass: x read once ----------------
        if hw_pad128 != hw:
            # Zero padding does not perturb the mean (divide by true H*W);
            # padded output lanes are sliced off below.
            x3 = jnp.pad(x3, ((0, 0), (0, 0), (0, hw_pad128 - hw)))
        cost = pl.CostEstimate(
            flops=int(2 * N * C * hw_pad128 + 4 * N * C * hidden),
            transcendentals=int(N * C),
            bytes_accessed=int(2 * N * slab_bytes),
        )
        y3 = pl.pallas_call(
            functools.partial(_se_fused_kernel, inv_hw=1.0 / hw),
            out_shape=jax.ShapeDtypeStruct((N, C, hw_pad128), x.dtype),
            grid=(N,),
            in_specs=[
                pl.BlockSpec((1, C, hw_pad128), lambda n: (n, 0, 0)),
                pl.BlockSpec((hidden, C), lambda n: (0, 0)),   # resident W1^T
                pl.BlockSpec((hidden, 1), lambda n: (0, 0)),
                pl.BlockSpec((C, hidden), lambda n: (0, 0)),   # resident W2^T
                pl.BlockSpec((C, 1), lambda n: (0, 0)),
            ],
            out_specs=pl.BlockSpec((1, C, hw_pad128), lambda n: (n, 0, 0)),
            compiler_params=pltpu.CompilerParams(
                dimension_semantics=("parallel",),
                vmem_limit_bytes=vmem_limit,
            ),
            cost_estimate=cost,
        )(x3, w1.T, b1.T, w2.T, b2.T)
        if hw_pad128 != hw:
            y3 = y3[:, :, :hw]
        return y3.reshape(N, C, H, W)

    # ---------------- two-pass streamed fallback ----------------
    # Pass 2 streams x and y (2 in + 2 out buffers); pass 1 streams only x
    # (2 in buffers) so it gets a larger tile when the structure allows.
    budget2 = vmem_limit // 5
    budget1 = vmem_limit // 3
    t2 = _choose_tile(hw, C, x.dtype, budget2)
    hw_pad = _round_up(hw, t2)                 # <= one pass-2 tile of padding
    t1 = _pass1_tile(hw_pad, t2, C, x.dtype, budget1)
    if hw_pad != hw:
        x3 = jnp.pad(x3, ((0, 0), (0, 0), (0, hw_pad - hw)))

    # Pass 1: streamed spatial sums (resident (1, C, 1) f32 accumulator).
    # TODO(synk): on v7x with N==1 the HW axis could additionally be split
    # "parallel" across the two TensorCores with partial sums combined below.
    cost1 = pl.CostEstimate(
        flops=int(N * C * hw_pad),
        transcendentals=0,
        bytes_accessed=int(N * bpl * hw_pad + N * C * 4),
    )
    sums = pl.pallas_call(
        _se_pool_kernel,
        out_shape=jax.ShapeDtypeStruct((N, C, 1), jnp.float32),
        grid=(N, hw_pad // t1),
        in_specs=[pl.BlockSpec((1, C, t1), lambda n, t: (n, 0, t))],
        out_specs=pl.BlockSpec((1, C, 1), lambda n, t: (n, 0, 0)),
        compiler_params=pltpu.CompilerParams(
            dimension_semantics=("parallel", "arbitrary"),
            vmem_limit_bytes=vmem_limit,
        ),
        cost_estimate=cost1,
    )(x3)

    # Tiny SE MLP + sigmoid as plain batched XLA over all N; emit the
    # (N, C, 1) layout in x's dtype directly (no separate transpose, and the
    # pass-2 multiply stays packed for bf16 on v6e/v7x).
    v = sums[:, :, 0] * (1.0 / hw)                                   # (N, C) f32
    h = jnp.maximum(v @ w1.astype(jnp.float32) + b1.astype(jnp.float32), 0.0)
    s = jax.nn.sigmoid(h @ w2.astype(jnp.float32) + b2.astype(jnp.float32))
    scores_c1 = s.astype(x.dtype)[:, :, None]                        # (N, C, 1)

    # Pass 2: y = x * score.
    cost2 = pl.CostEstimate(
        flops=int(N * C * hw_pad),
        transcendentals=0,
        bytes_accessed=int(2 * N * bpl * hw_pad),
    )
    y3 = pl.pallas_call(
        _se_scale_kernel,
        out_shape=jax.ShapeDtypeStruct((N, C, hw_pad), x.dtype),
        grid=(N, hw_pad // t2),
        in_specs=[
            pl.BlockSpec((1, C, t2), lambda n, t: (n, 0, t)),
            pl.BlockSpec((1, C, 1), lambda n, t: (n, 0, 0)),         # resident
        ],
        out_specs=pl.BlockSpec((1, C, t2), lambda n, t: (n, 0, t)),
        compiler_params=pltpu.CompilerParams(
            dimension_semantics=("parallel", "parallel"),
            vmem_limit_bytes=vmem_limit,
        ),
        cost_estimate=cost2,
    )(x3, scores_c1)

    if hw_pad != hw:
        y3 = y3[:, :, :hw]
    return y3.reshape(N, C, H, W)


def _reference(x, w1, b1, w2, b2):
    # Pure-JAX reference of the PyTorch forward pass.
    v = jnp.mean(x, axis=(2, 3))                                     # (N, C)
    h = jnp.maximum(v @ w1 + b1, 0.0)
    s = jax.nn.sigmoid(h @ w2 + b2)
    return x * s[:, :, None, None]


if __name__ == "__main__":
    # SEBlock(in_channels=4, reduction_ratio=2) at small shapes.
    N, C, H, W = 2, 4, 16, 16
    reduction_ratio = 2
    hidden = C // reduction_ratio

    key = jax.random.PRNGKey(0)
    kx, k1, k2, k3, k4 = jax.random.split(key, 5)

    x = jax.random.normal(kx, (N, C, H, W), dtype=jnp.float32)

    # Deterministic parameter init (PyTorch Linear stores W as (out, in);
    # here we store the transposed (in, out) so the wrapper uses v @ w1).
    bound1 = 1.0 / jnp.sqrt(C)
    w1 = jax.random.uniform(k1, (C, hidden), jnp.float32, -bound1, bound1)
    b1 = jax.random.uniform(k2, (1, hidden), jnp.float32, -bound1, bound1)
    bound2 = 1.0 / jnp.sqrt(hidden)
    w2 = jax.random.uniform(k3, (hidden, C), jnp.float32, -bound2, bound2)
    b2 = jax.random.uniform(k4, (1, C), jnp.float32, -bound2, bound2)

    y_ref = _reference(x, w1, b1, w2, b2)

    # Fused single-pass path (default: one sample fits VMEM).
    y_fused = jax.jit(se_block)(x, w1, b1, w2, b2)
    jax.block_until_ready(y_fused)
    assert y_fused.shape == (N, C, H, W)
    assert jnp.allclose(y_fused, y_ref, atol=1e-5, rtol=1e-5), "fused mismatch"

    # Two-pass streamed fallback (taken automatically for huge samples;
    # forced here so both code paths are compile- and correctness-checked).
    y_split = jax.jit(functools.partial(se_block, force_two_pass=True))(
        x, w1, b1, w2, b2)
    jax.block_until_ready(y_split)
    assert jnp.allclose(y_split, y_ref, atol=1e-5, rtol=1e-5), "two-pass mismatch"

    print("KERNEL_OK")
</pallas_src>

<mosaic_0001>
module attributes {stable_mosaic.version = 11 : i64} {
  func.func @_se_fused_kernel(%arg0: i32, %arg1: memref<1x4x256xf32, #tpu.memory_space<vmem>>, %arg2: memref<2x4xf32, #tpu.memory_space<vmem>>, %arg3: memref<2x1xf32, #tpu.memory_space<vmem>>, %arg4: memref<4x2xf32, #tpu.memory_space<vmem>>, %arg5: memref<4x1xf32, #tpu.memory_space<vmem>>, %arg6: memref<1x4x256xf32, #tpu.memory_space<vmem>>) attributes {dimension_semantics = [#tpu.dimension_semantics<parallel>], iteration_bounds = array<i64: 2>, scalar_prefetch = 0 : i64, scratch_operands = 0 : i64, tpu.core_type = #tpu.core_type<tc>, window_params = [{transform_indices = @transform_0, window_bounds = array<i64: 1, 4, 256>}, {pipeline_mode = #tpu.pipeline_mode<synchronous>, transform_indices = @transform_1, window_bounds = array<i64: 2, 4>}, {pipeline_mode = #tpu.pipeline_mode<synchronous>, transform_indices = @transform_2, window_bounds = array<i64: 2, 1>}, {pipeline_mode = #tpu.pipeline_mode<synchronous>, transform_indices = @transform_3, window_bounds = array<i64: 4, 2>}, {pipeline_mode = #tpu.pipeline_mode<synchronous>, transform_indices = @transform_4, window_bounds = array<i64: 4, 1>}, {transform_indices = @transform_5, window_bounds = array<i64: 1, 4, 256>}]} {
    %c0 = arith.constant 0 : index
    %c0_0 = arith.constant 0 : index
    %c0_1 = arith.constant 0 : index
    %0 = vector.load %arg1[%c0, %c0_0, %c0_1] : memref<1x4x256xf32, #tpu.memory_space<vmem>>, vector<1x4x256xf32>
    %1 = vector.shape_cast %0 : vector<1x4x256xf32> to vector<4x256xf32>
    %cst = arith.constant dense<0.000000e+00> : vector<4xf32>
    %2 = vector.multi_reduction <add>, %1, %cst [1] : vector<4x256xf32> to vector<4xf32>
    %3 = vector.shape_cast %2 : vector<4xf32> to vector<4x1xf32>
    %cst_2 = arith.constant 3.906250e-03 : f32
    %4 = vector.broadcast %cst_2 : f32 to vector<4x1xf32>
    %5 = arith.mulf %3, %4 : vector<4x1xf32>
    %c0_3 = arith.constant 0 : index
    %c0_4 = arith.constant 0 : index
    %6 = vector.load %arg2[%c0_3, %c0_4] : memref<2x4xf32, #tpu.memory_space<vmem>>, vector<2x4xf32>
    %cst_5 = arith.constant dense<0.000000e+00> : vector<2x1xf32>
    %7 = tpu.matmul %6, %5, %cst_5 {dimension_numbers = #tpu.dot_dimension_numbers<[1], [0], [0], [1], [0, 0, 1, 1], [], []>} : vector<2x4xf32>, vector<4x1xf32>, vector<2x1xf32> -> vector<2x1xf32>
    %c0_6 = arith.constant 0 : index
    %c0_7 = arith.constant 0 : index
    %8 = vector.load %arg3[%c0_6, %c0_7] : memref<2x1xf32, #tpu.memory_space<vmem>>, vector<2x1xf32>
    %9 = arith.addf %7, %8 : vector<2x1xf32>
    %cst_8 = arith.constant 0.000000e+00 : f32
    %10 = vector.broadcast %cst_8 : f32 to vector<2x1xf32>
    %11 = arith.maximumf %9, %10 : vector<2x1xf32>
    %c0_9 = arith.constant 0 : index
    %c0_10 = arith.constant 0 : index
    %12 = vector.load %arg4[%c0_9, %c0_10] : memref<4x2xf32, #tpu.memory_space<vmem>>, vector<4x2xf32>
    %cst_11 = arith.constant dense<0.000000e+00> : vector<4x1xf32>
    %13 = tpu.matmul %12, %11, %cst_11 {dimension_numbers = #tpu.dot_dimension_numbers<[1], [0], [0], [1], [0, 0, 1, 1], [], []>} : vector<4x2xf32>, vector<2x1xf32>, vector<4x1xf32> -> vector<4x1xf32>
    %c0_12 = arith.constant 0 : index
    %c0_13 = arith.constant 0 : index
    %14 = vector.load %arg5[%c0_12, %c0_13] : memref<4x1xf32, #tpu.memory_space<vmem>>, vector<4x1xf32>
    %15 = arith.addf %13, %14 : vector<4x1xf32>
    %cst_14 = arith.constant 0.000000e+00 : f32
    %16 = vector.broadcast %cst_14 : f32 to vector<4x1xf32>
    %17 = arith.subf %16, %15 : vector<4x1xf32>
    %18 = math.exp %17 : vector<4x1xf32>
    %cst_15 = arith.constant 1.000000e+00 : f32
    %19 = vector.broadcast %cst_15 : f32 to vector<4x1xf32>
    %20 = arith.addf %19, %18 : vector<4x1xf32>
    %cst_16 = arith.constant 1.000000e+00 : f32
    %21 = vector.broadcast %cst_16 : f32 to vector<4x1xf32>
    %22 = arith.divf %21, %20 : vector<4x1xf32>
    %23 = vector.broadcast %22 : vector<4x1xf32> to vector<4x256xf32>
    %24 = arith.mulf %1, %23 : vector<4x256xf32>
    %c0_17 = arith.constant 0 : index
    %c0_18 = arith.constant 0 : index
    %c0_19 = arith.constant 0 : index
    %25 = vector.load %arg6[%c0_17, %c0_18, %c0_19] : memref<1x4x256xf32, #tpu.memory_space<vmem>>, vector<1x4x256xf32>
    %26 = vector.shape_cast %25 : vector<1x4x256xf32> to vector<4x256xf32>
    %27 = vector.shape_cast %24 : vector<4x256xf32> to vector<1x4x256xf32>
    tpu.vector_store %arg6[%c0_17, %c0_18, %c0_19], %27 {strides = array<i32>} : memref<1x4x256xf32, #tpu.memory_space<vmem>>, vector<1x4x256xf32>,
    return
  }
  func.func @transform_0(%arg0: i32) -> (i32, i32, i32) {
    %c0_i32 = arith.constant 0 : i32
    %c0_i32_0 = arith.constant 0 : i32
    %c0_i32_1 = arith.constant 0 : i32
    return %arg0, %c0_i32, %c0_i32_0 : i32, i32, i32
  }
  func.func @transform_1(%arg0: i32) -> (i32, i32) {
    %c0_i32 = arith.constant 0 : i32
    %c0_i32_0 = arith.constant 0 : i32
    %c0_i32_1 = arith.constant 0 : i32
    return %c0_i32, %c0_i32_0 : i32, i32
  }
  func.func @transform_2(%arg0: i32) -> (i32, i32) {
    %c0_i32 = arith.constant 0 : i32
    %c0_i32_0 = arith.constant 0 : i32
    %c0_i32_1 = arith.constant 0 : i32
    return %c0_i32, %c0_i32_0 : i32, i32
  }
  func.func @transform_3(%arg0: i32) -> (i32, i32) {
    %c0_i32 = arith.constant 0 : i32
    %c0_i32_0 = arith.constant 0 : i32
    %c0_i32_1 = arith.constant 0 : i32
    return %c0_i32, %c0_i32_0 : i32, i32
  }
  func.func @transform_4(%arg0: i32) -> (i32, i32) {
    %c0_i32 = arith.constant 0 : i32
    %c0_i32_0 = arith.constant 0 : i32
    %c0_i32_1 = arith.constant 0 : i32
    return %c0_i32, %c0_i32_0 : i32, i32
  }
  func.func @transform_5(%arg0: i32) -> (i32, i32, i32) {
    %c0_i32 = arith.constant 0 : i32
    %c0_i32_0 = arith.constant 0 : i32
    %c0_i32_1 = arith.constant 0 : i32
    return %arg0, %c0_i32, %c0_i32_0 : i32, i32, i32
  }
}

</mosaic_0001>

<bundles_post_ra>
// kernel: se_block.1
= control target key start
LH: loop header
LB: loop body
LE: loop exit
PB: predicated region body
PF: predicated region fallthrough
CT: control target
= control target key end

     0   :  { %s456_s18 = smov 0   ;;  %s492_s0 = inlined_call_operand.vmem [shape: f32[2,4,256], index: 0, kind: input, shape index: {}]   ;;  %s493_s1 = inlined_call_operand.vmem [shape: f32[2,4], index: 1, kind: input, shape index: {}]   ;;  %s494_s2 = inlined_call_operand.vmem [shape: f32[2,1], index: 2, kind: input, shape index: {}]   ;;  %s495_s3 = inlined_call_operand.vmem [shape: f32[4,2], index: 3, kind: input, shape index: {}]   ;;  %s496_s4 = inlined_call_operand.vmem [shape: f32[4,1], index: 4, kind: input, shape index: {}]   ;;  %s497_s5 = inlined_call_operand.vmem [shape: f32[2,4,256], index: 5, kind: output, shape index: {}]  }
   0x1 LB: > { %s384_s19 = sadd.s32 4294967295, %s422_s18   ;;  %p388_p0 = scmp.ge.s32.totalorder %s422_s18, 1  ;;  %s422_s18 = sphi %s456_s18, %s15_s18  }
   0x2   : > { %p187_p1 = scmp.lt.s32.totalorder %s422_s18, 3 }
   0x4   : > { %p188_p2 = pnand %p388_p0, %p187_p1 }
   0x5   : > { %p215_p3 = scmp.lt.s32.totalorder (!%p188_p2), %s384_s19, 1 }
   0x6   : > { %191 = sbr.rel (%p188_p2) target bundleno = 554 (0x22a), region = 40 }
   0xb   : > { %s499_s19 = smov (!%p215_p3, %s384_s19), 1  ;;  %vm232_vm0 = vcmask 1043456   ;;  %v239_v8 = vld [vmem:[%s493_s1] sm:$0x3]  ;;  %vm241_vm1 = vcmask 31744   ;;  %vm275_vm2 = vcmask 1041408  }
   0xc   : > { %s399_s20 = sshll.u32 %s499_s19, 3  ;;  %v240_v9 = vld [vmem:[%s494_s2] sm:$0x3]  ;;  %vm271_vm3 = vcmask 15360   ;;  %v424_v14 = vmov 0  }
   0xd   : > { %s219_s23 = scalar_lea.vmem %s492_s0, %s399_s20  ;;  %v269_v13 = vld [vmem:[%s495_s3] sm:$0xf]  ;;  %411 = vset.pattern.permute.xlu0 %v424_v14  ;;  %v425_v32 = vmov 839922192   ;;  %s224_s9 = scalar_lea.vmem %s497_s5, %s399_s20 }
   0xe   : > { %v225_v0 = vld [vmem:[%s219_s23] sm:$0xff]  ;;  %v323_v33 = vunpack.c.l.s4 %v425_v32 }
   0xf   : > { %227 = vst [vmem:[#allocation1] ss:$2 sm:$0xff] %v225_v0  ;;  %v270_v15 = vld [vmem:[%s496_s4] sm:$0xf] }
  0x10   : > { %v324_v34 = vunpack.c.0.s8 %v323_v33 }
  0x16   : > { %v228_v1 = vld.sshfl [vmem:[#allocation1] sm:$0xff pattern:$0x75316420]  ;;  %v229_v2 = vld.sshfl [vmem:[#allocation1 + $0x8] sm:$0xff pattern:$0x75316420] }
  0x17   : > { %v233_v3 = vsel %vm232_vm0, %v228_v1, 0.0  ;;  %v234_v4 = vsel %vm232_vm0, %v229_v2, 0.0 }
  0x18   : > { %v235_v5 = vadd.f32 %v234_v4, %v233_v3 }
  0x1a   : > { %236 = vadd.xlane.f32.xlu0 %v235_v5 }
  0x8d   : > { %v237_v6 = vpop.xlane.xlu0 %236 }
  0x8e   : > { %v238_v7 = vmul.f32 0.00390625, %v237_v6 }
  0x90   : > { %393 = vmatpush.msk.msra.mxu0 %vm232_vm0, %v238_v7 }
  0x91   : > { %394 = vmatmul.msk.f32.vlgmr.msra.gmra.mxu0 %vm241_vm1, %v239_v8 }
 0x10e   : > { %v265_v10 = vpop.f32.mrf.mxu0 }
 0x10f   : > { %v266_v11 = vadd.f32 %v265_v10, %v240_v9 }
 0x111   : > { %v268_v12 = vmax.f32 %v266_v11, 0.0 }
 0x113   : > { %395 = vmatpush.msk.msra.mxu1 %vm275_vm2, %v268_v12 }
 0x114   : > { %396 = vmatmul.msk.f32.vlgmr.msra.gmra.mxu1 %vm271_vm3, %v269_v13 }
 0x191   : > { %v296_v16 = vpop.f32.mrf.mxu1 }
 0x192   : > { %v297_v17 = vadd.f32 %v296_v16, %v270_v15 }
 0x194   : > { %v299_v18 = vsub.f32 0.0, %v297_v17 }
 0x196   : > { %v300_v19 = vmul.f32 1.442695, %v299_v18 }
 0x198   : > { %412 = vpow2.f32 %v300_v19 }
 0x19e   : > { %v413_v20 = vpop.eup %412 }
 0x19f   : > { %v302_v21 = vadd.f32 1.0, %v413_v20 }
 0x1a1   : > { %414 = vrcp.f32 %v302_v21  ;;  %v314_v25 = vand.u32 2147483648, %v302_v21  ;;  %v312_v27 = vand.u32 2147483647, %v302_v21  ;;  %vm308_vm5 = vweird.f32 %v302_v21 }
 0x1a3   : > { %v315_v29 = vor.u32 1.1754944e-38, %v314_v25  ;;  %vm313_vm7 = vcmp.eq.f32.partialorder %v312_v27, 8.507059e+37 }
 0x1a7   : > { %v415_v22 = vpop.eup %414 }
 0x1a8   : > { %v304_v23 = vmul.f32 %v415_v22, %v302_v21  ;;  %vm309_vm4 = vweird.f32 %v415_v22 }
 0x1a9   : > { %vm310_vm6 = vmor %vm308_vm5, %vm309_vm4 }
 0x1aa   : > { %v305_v24 = vsub.f32 1.0, %v304_v23 }
 0x1ac   : > { %v306_v26 = vmul.f32 %v415_v22, %v305_v24 }
 0x1ae   : > { %v307_v28 = vadd.f32 %v415_v22, %v306_v26 }
 0x1b0   : > { %v311_v30 = vsel %vm310_vm6, %v415_v22, %v307_v28 }
 0x1b1   : > { %v316_v31 = vsel %vm313_vm7, %v315_v29, %v311_v30 }
 0x1b2   : > { %320 = vperm.xlu0 %411, %v316_v31  }
 0x224   : > { %v321_v35 = vpop.permute.xlu0 %320 }
 0x225   : > { %v325_v36 = vperm.slane %v321_v35, %v324_v34 }
 0x227   : > { %v327_v37 = vmul.f32 %v325_v36, %v225_v0 }
 0x229   : > { %328 = vst [vmem:[%s224_s9] sm:$0xff] %v327_v37 }
 0x22a PF: > { %s15_s18 = sadd.s32 1, %s422_s18  }
 0x22b   : > { %p12_p4 = scmp.ge.s32.totalorder %s15_s18, 4  }
 0x22d   :  { %14 = sbr.rel (!%p12_p4) target bundleno = 1 (0x1), region = 70 }

</bundles_post_ra>
